<compile_context>
chip_gen: v6e
topology: v6e:2x2x1
jax: 0.10.0
libtpu: 0.0.40
codegen_flags: <defaults>
</compile_context>

<pallas_src>
import functools
import math

import jax
import jax.numpy as jnp
from jax.experimental import pallas as pl
from jax.experimental.pallas import tpu as pltpu

LN_EPS = 1e-5  # PyTorch nn.LayerNorm default


def _round_up(x: int, m: int) -> int:
    return (x + m - 1) // m * m


def _cdiv(a: int, b: int) -> int:
    return (a + b - 1) // b


def _gelu(x, tanh_approx: bool):
    if tanh_approx:
        # EUP tanh path (default): moves the nonlinearity off the VALU slot.
        # Numerics delta vs PyTorch exact GELU is <~3e-3 absolute.
        c = math.sqrt(2.0 / math.pi)
        return 0.5 * x * (1.0 + jnp.tanh(c * (x + 0.044715 * x * x * x)))
    # PyTorch nn.GELU default (approximate='none'): 0.5*x*(1+erf(x/sqrt(2)))
    return 0.5 * x * (1.0 + jax.lax.erf(x * (1.0 / math.sqrt(2.0))))


def _layernorm_padded(x, gamma, beta, real_dim: int):
    """LayerNorm over the last dim where columns >= real_dim are zero-padded.

    Uses sum/real_dim and E[x^2]-E[x]^2 so zero padding does not bias the
    statistics; var is clamped at 0 to guard f32 cancellation. gamma/beta are
    zero in padded columns, so those lanes stay exactly zero downstream.
    """
    inv_n = 1.0 / float(real_dim)
    mean = jnp.sum(x, axis=-1, keepdims=True) * inv_n
    mean_sq = jnp.sum(x * x, axis=-1, keepdims=True) * inv_n
    var = jnp.maximum(mean_sq - mean * mean, 0.0)
    return (x - mean) * jax.lax.rsqrt(var + LN_EPS) * gamma + beta


def _dropout_mask(x, p: float):
    # Mask only: the 1/(1-p) inverted-dropout scale is folded into the
    # following linear layer's weights in prepare_params(), so this is a
    # single integer-threshold compare + select.
    bits = pltpu.bitcast(pltpu.prng_random_bits(x.shape), jnp.uint32)
    thresh = jnp.uint32(min(int(round(p * (2.0 ** 32))), 2 ** 32 - 1))
    return jnp.where(bits >= thresh, x, 0.0)


def _matmul(a, w, use_bf16: bool):
    if use_bf16:
        a = a.astype(jnp.bfloat16)  # weights already bf16 from prepare_params
    return jnp.dot(a, w, preferred_element_type=jnp.float32)


def ff_block_kernel(
    seed_ref,            # scalar-prefetch (SMEM): int32[1]
    x_ref,               # (TR, Dp)
    g1_ref, be1_ref,     # (1, Dp) layernorm1 affine (zero-padded)
    w1_ref, b1_ref,      # (Dp, Hp), (1, Hp)
    g2_ref, be2_ref,     # (1, Hp) layernorm2 affine (zero-padded)
    w2_ref, b2_ref,      # (Hp, Dp), (1, Dp)
    o_ref,               # (TR, Dp)
    *, dropout_p: float, apply_dropout: bool,
    d_real: int, h_real: int, use_bf16_matmul: bool, gelu_tanh: bool,
):
    use_dropout = apply_dropout and dropout_p > 0.0
    if use_dropout:
        # TODO(synk): in-kernel PRNG only lowers on a real TPU (Mosaic); it is
        # unavailable under CPU/interpret execution and its mask cannot
        # bit-match torch.nn.functional.dropout's RNG stream.
        pltpu.prng_seed(seed_ref[0], pl.program_id(0))

    x = x_ref[...].astype(jnp.float32)

    # ---- Norm1 -> Dropout -> Linear1 -> GELU ------------------------------
    h = _layernorm_padded(x, g1_ref[...], be1_ref[...], d_real)
    if use_dropout:
        h = _dropout_mask(h, dropout_p)
    h = _matmul(h, w1_ref[...], use_bf16_matmul) + b1_ref[...]
    h = _gelu(h, gelu_tanh)

    # ---- Norm2 -> Dropout -> Linear2 -> +skip -> GELU ---------------------
    h = _layernorm_padded(h, g2_ref[...], be2_ref[...], h_real)
    if use_dropout:
        h = _dropout_mask(h, dropout_p)
    y = _matmul(h, w2_ref[...], use_bf16_matmul) + b2_ref[...]
    # Residual: re-read the tile from VMEM instead of holding a (TR, Dp) f32
    # value live across both matmuls (avoids register spills).
    y = y + x_ref[...].astype(jnp.float32)
    o_ref[...] = _gelu(y, gelu_tanh).astype(o_ref.dtype)


def prepare_params(params, *, dropout_p=0.25, apply_dropout=False,
                   use_bf16_matmul=True):
    """One-time padding / casting of FFBlock parameters (outside the hot path).

    Returns (prepared_arrays, static_meta). Doing this per-call would add
    pure HBM traffic in front of a memory-bound kernel.
    """
    D, H = params["w1"].shape
    Dp, Hp = _round_up(D, 128), _round_up(H, 128)
    w_dtype = jnp.bfloat16 if use_bf16_matmul else jnp.float32
    # Fold the inverted-dropout scale into the weights consuming the dropped
    # activations (commutes with the linear layer; biases unaffected).
    scale = 1.0 / (1.0 - dropout_p) if (apply_dropout and dropout_p > 0.0) else 1.0

    def pad_mat(a, r, c):
        return jnp.pad(a, ((0, r - a.shape[0]), (0, c - a.shape[1])))

    def pad_vec(a, c):
        return jnp.pad(a.reshape(1, -1), ((0, 0), (0, c - a.shape[0])))

    prepared = dict(
        g1=pad_vec(params["g1"], Dp), be1=pad_vec(params["be1"], Dp),
        w1=pad_mat(params["w1"] * scale, Dp, Hp).astype(w_dtype),
        b1=pad_vec(params["b1"], Hp),
        g2=pad_vec(params["g2"], Hp), be2=pad_vec(params["be2"], Hp),
        w2=pad_mat(params["w2"] * scale, Hp, Dp).astype(w_dtype),
        b2=pad_vec(params["b2"], Dp),
    )
    meta = dict(d=D, h=H, dp=Dp, hp=Hp, dropout_p=float(dropout_p),
                apply_dropout=bool(apply_dropout),
                use_bf16_matmul=bool(use_bf16_matmul))
    return prepared, meta


def _choose_row_tiling(rows: int, row_tile: int):
    """Balanced, 8-aligned row tiles; >= 2 grid steps when possible (v7x)."""
    r8 = _round_up(max(rows, 1), 8)
    n_tiles = _cdiv(r8, row_tile)
    if n_tiles == 1 and r8 >= 16:
        n_tiles = 2                      # give both v7x TensorCores a step
    tr = _round_up(_cdiv(r8, n_tiles), 8)
    n_tiles = _cdiv(r8, tr)
    return tr, tr * n_tiles, n_tiles


def ff_block(x, prepared, meta, *, seed=0, gelu_tanh=True, row_tile=512,
             vmem_limit_bytes=48 * 1024 * 1024):
    """FFBlock forward. x: (B, N, D) -> (B, N, D), same dtype as x.

    Passing bf16 x gives a narrow activation-I/O path (halves HBM traffic);
    LN statistics and MXU accumulation stay in f32 regardless.
    """
    B, N, D = x.shape
    assert D == meta["d"], "x feature dim does not match prepared params"
    Dp, Hp = meta["dp"], meta["hp"]
    R = B * N
    TR, Rp, n_tiles = _choose_row_tiling(R, int(row_tile))

    x2 = x.reshape(R, D)
    needs_pad = (Rp != R) or (Dp != D)
    if needs_pad:
        # Only pay the extra HBM copy for ragged shapes; the common aligned
        # case (D % 128 == 0, rows divide into tiles) is zero-copy in/out.
        x2 = jnp.pad(x2, ((0, Rp - R), (0, Dp - D)))

    seed_arr = jnp.asarray([seed], dtype=jnp.int32)

    # Weights / affine params use constant block indices -> DMAed once and
    # resident in VMEM across all grid steps.
    const = lambda shp: pl.BlockSpec(shp, lambda i, s: (0, 0))
    rows = lambda shp: pl.BlockSpec(shp, lambda i, s: (i, 0))

    kernel = functools.partial(
        ff_block_kernel,
        dropout_p=meta["dropout_p"], apply_dropout=meta["apply_dropout"],
        d_real=meta["d"], h_real=meta["h"],
        use_bf16_matmul=meta["use_bf16_matmul"], gelu_tanh=bool(gelu_tanh),
    )

    out2 = pl.pallas_call(
        kernel,
        out_shape=jax.ShapeDtypeStruct((Rp, Dp), x.dtype),
        grid_spec=pltpu.PrefetchScalarGridSpec(
            num_scalar_prefetch=1,
            grid=(n_tiles,),
            in_specs=[
                rows((TR, Dp)),
                const((1, Dp)), const((1, Dp)),
                const((Dp, Hp)), const((1, Hp)),
                const((1, Hp)), const((1, Hp)),
                const((Hp, Dp)), const((1, Dp)),
            ],
            out_specs=rows((TR, Dp)),
        ),
        compiler_params=pltpu.CompilerParams(
            dimension_semantics=("parallel",),
            vmem_limit_bytes=int(vmem_limit_bytes),
        ),
    )(seed_arr, x2,
      prepared["g1"], prepared["be1"], prepared["w1"], prepared["b1"],
      prepared["g2"], prepared["be2"], prepared["w2"], prepared["b2"])

    if needs_pad:
        out2 = out2[:R, :D]
    return out2.reshape(B, N, D)


def init_params(key, input_dim, hidden_dim):
    """Deterministic synthetic params, shapes matching FFBlock.__init__."""
    k = jax.random.split(key, 4)
    lim1 = 1.0 / math.sqrt(input_dim)    # nn.Linear init: U(-1/sqrt(fan_in), .)
    lim2 = 1.0 / math.sqrt(hidden_dim)
    return {
        "g1": jnp.ones((input_dim,), jnp.float32),     # LayerNorm weight
        "be1": jnp.zeros((input_dim,), jnp.float32),   # LayerNorm bias
        "w1": jax.random.uniform(k[0], (input_dim, hidden_dim), jnp.float32,
                                 -lim1, lim1),
        "b1": jax.random.uniform(k[1], (hidden_dim,), jnp.float32, -lim1, lim1),
        "g2": jnp.ones((hidden_dim,), jnp.float32),
        "be2": jnp.zeros((hidden_dim,), jnp.float32),
        "w2": jax.random.uniform(k[2], (hidden_dim, input_dim), jnp.float32,
                                 -lim2, lim2),
        "b2": jax.random.uniform(k[3], (input_dim,), jnp.float32, -lim2, lim2),
    }


def ff_block_reference(x, params, *, gelu_tanh=False):
    """Plain-JAX reference of the FFBlock forward (dropout off)."""
    B, N, D = x.shape
    x2 = x.reshape(-1, D).astype(jnp.float32)

    def ln(v, g, b):
        m = jnp.mean(v, axis=-1, keepdims=True)
        var = jnp.mean((v - m) ** 2, axis=-1, keepdims=True)
        return (v - m) * jax.lax.rsqrt(var + LN_EPS) * g + b

    h = ln(x2, params["g1"], params["be1"])
    h = _gelu(h @ params["w1"] + params["b1"], gelu_tanh)
    h = ln(h, params["g2"], params["be2"])
    y = h @ params["w2"] + params["b2"] + x2
    return _gelu(y, gelu_tanh).reshape(B, N, D)


if __name__ == "__main__":
    key = jax.random.PRNGKey(0)
    k1, k2, k3, k4 = jax.random.split(key, 4)

    # Case A: FFBlock(input_dim=32, hidden_dim=128); x is (bs=2, n=8, 32).
    B, N, D, H = 2, 8, 32, 128
    x = jax.random.normal(k1, (B, N, D), jnp.float32)
    params = init_params(k2, D, H)

    # Eval-mode forward (dropout off), exact erf-GELU / f32 matmul: tight check.
    prep_exact, meta_exact = prepare_params(params, apply_dropout=False,
                                            use_bf16_matmul=False)
    out = jax.block_until_ready(ff_block(x, prep_exact, meta_exact,
                                         gelu_tanh=False))
    ref = ff_block_reference(x, params, gelu_tanh=False)
    assert jnp.allclose(out, ref, atol=1e-4, rtol=1e-4), "exact path mismatch"

    # Default fast path: bf16 MXU operands (f32 accumulation) + tanh GELU (EUP).
    prep_fast, meta_fast = prepare_params(params, apply_dropout=False)
    out_fast = jax.block_until_ready(ff_block(x, prep_fast, meta_fast))
    ref_tanh = ff_block_reference(x, params, gelu_tanh=True)
    assert jnp.allclose(out_fast, ref_tanh, atol=5e-2, rtol=5e-2), "fast path"

    # bf16 activation-I/O option (same kernel, narrower HBM traffic).
    out_bf16 = jax.block_until_ready(
        ff_block(x.astype(jnp.bfloat16), prep_fast, meta_fast))
    assert out_bf16.dtype == jnp.bfloat16

    # Case B: lane-aligned features (D=128 -> no feature padding) with ragged
    # rows (n=9 -> balanced 8-aligned row tiles, small padded tail only).
    B2, N2, D2, H2 = 2, 9, 128, 128
    x_b = jax.random.normal(k3, (B2, N2, D2), jnp.float32)
    params_b = init_params(k4, D2, H2)
    prep_b, meta_b = prepare_params(params_b, apply_dropout=False,
                                    use_bf16_matmul=False)
    out_b = jax.block_until_ready(ff_block(x_b, prep_b, meta_b,
                                           gelu_tanh=False))
    ref_b = ff_block_reference(x_b, params_b, gelu_tanh=False)
    assert jnp.allclose(out_b, ref_b, atol=1e-4, rtol=1e-4), "row-pad path"

    # Case C: fully aligned shapes -> zero-copy wrapper path (no pad / slice).
    x_c = x_b[:, :8]
    out_c = jax.block_until_ready(ff_block(x_c, prep_b, meta_b,
                                           gelu_tanh=False))
    ref_c = ff_block_reference(x_c, params_b, gelu_tanh=False)
    assert jnp.allclose(out_c, ref_c, atol=1e-4, rtol=1e-4), "zero-copy path"

    # Training-mode dropout (in-kernel hardware PRNG) remains available via
    # apply_dropout=True in prepare_params + ff_block but needs a real TPU
    # backend, so it is intentionally not exercised in this demo.

    print("KERNEL_OK")
</pallas_src>

<mosaic_0001>
module attributes {stable_mosaic.version = 11 : i64} {
  func.func @ff_block_kernel(%arg0: i32, %arg1: memref<1xi32, #tpu.memory_space<smem>>, %arg2: memref<8x128xf32, #tpu.memory_space<vmem>>, %arg3: memref<1x128xf32, #tpu.memory_space<vmem>>, %arg4: memref<1x128xf32, #tpu.memory_space<vmem>>, %arg5: memref<128x128xf32, #tpu.memory_space<vmem>>, %arg6: memref<1x128xf32, #tpu.memory_space<vmem>>, %arg7: memref<1x128xf32, #tpu.memory_space<vmem>>, %arg8: memref<1x128xf32, #tpu.memory_space<vmem>>, %arg9: memref<128x128xf32, #tpu.memory_space<vmem>>, %arg10: memref<1x128xf32, #tpu.memory_space<vmem>>, %arg11: memref<8x128xf32, #tpu.memory_space<vmem>>) attributes {dimension_semantics = [#tpu.dimension_semantics<parallel>], iteration_bounds = array<i64: 2>, scalar_prefetch = 1 : i64, scratch_operands = 0 : i64, tpu.core_type = #tpu.core_type<tc>, window_params = [{transform_indices = @transform_0, window_bounds = array<i64: 8, 128>}, {pipeline_mode = #tpu.pipeline_mode<synchronous>, transform_indices = @transform_1, window_bounds = array<i64: 1, 128>}, {pipeline_mode = #tpu.pipeline_mode<synchronous>, transform_indices = @transform_2, window_bounds = array<i64: 1, 128>}, {pipeline_mode = #tpu.pipeline_mode<synchronous>, transform_indices = @transform_3, window_bounds = array<i64: 128, 128>}, {pipeline_mode = #tpu.pipeline_mode<synchronous>, transform_indices = @transform_4, window_bounds = array<i64: 1, 128>}, {pipeline_mode = #tpu.pipeline_mode<synchronous>, transform_indices = @transform_5, window_bounds = array<i64: 1, 128>}, {pipeline_mode = #tpu.pipeline_mode<synchronous>, transform_indices = @transform_6, window_bounds = array<i64: 1, 128>}, {pipeline_mode = #tpu.pipeline_mode<synchronous>, transform_indices = @transform_7, window_bounds = array<i64: 128, 128>}, {pipeline_mode = #tpu.pipeline_mode<synchronous>, transform_indices = @transform_8, window_bounds = array<i64: 1, 128>}, {transform_indices = @transform_9, window_bounds = array<i64: 8, 128>}]} {
    %c0 = arith.constant 0 : index
    %c0_0 = arith.constant 0 : index
    %0 = vector.load %arg2[%c0, %c0_0] : memref<8x128xf32, #tpu.memory_space<vmem>>, vector<8x128xf32>
    %c0_1 = arith.constant 0 : index
    %c0_2 = arith.constant 0 : index
    %1 = vector.load %arg3[%c0_1, %c0_2] : memref<1x128xf32, #tpu.memory_space<vmem>>, vector<1x128xf32>
    %c0_3 = arith.constant 0 : index
    %c0_4 = arith.constant 0 : index
    %2 = vector.load %arg4[%c0_3, %c0_4] : memref<1x128xf32, #tpu.memory_space<vmem>>, vector<1x128xf32>
    %cst = arith.constant dense<0.000000e+00> : vector<8xf32>
    %3 = vector.multi_reduction <add>, %0, %cst [1] : vector<8x128xf32> to vector<8xf32>
    %4 = vector.shape_cast %3 : vector<8xf32> to vector<8x1xf32>
    %cst_5 = arith.constant 3.125000e-02 : f32
    %5 = vector.broadcast %cst_5 : f32 to vector<8x1xf32>
    %6 = arith.mulf %4, %5 : vector<8x1xf32>
    %7 = arith.mulf %0, %0 : vector<8x128xf32>
    %cst_6 = arith.constant dense<0.000000e+00> : vector<8xf32>
    %8 = vector.multi_reduction <add>, %7, %cst_6 [1] : vector<8x128xf32> to vector<8xf32>
    %9 = vector.shape_cast %8 : vector<8xf32> to vector<8x1xf32>
    %cst_7 = arith.constant 3.125000e-02 : f32
    %10 = vector.broadcast %cst_7 : f32 to vector<8x1xf32>
    %11 = arith.mulf %9, %10 : vector<8x1xf32>
    %12 = arith.mulf %6, %6 : vector<8x1xf32>
    %13 = arith.subf %11, %12 : vector<8x1xf32>
    %cst_8 = arith.constant 0.000000e+00 : f32
    %14 = vector.broadcast %cst_8 : f32 to vector<8x1xf32>
    %15 = arith.maximumf %13, %14 : vector<8x1xf32>
    %16 = vector.broadcast %6 : vector<8x1xf32> to vector<8x128xf32>
    %17 = arith.subf %0, %16 : vector<8x128xf32>
    %cst_9 = arith.constant 9.99999974E-6 : f32
    %18 = vector.broadcast %cst_9 : f32 to vector<8x1xf32>
    %19 = arith.addf %15, %18 : vector<8x1xf32>
    %20 = math.rsqrt %19 : vector<8x1xf32>
    %21 = vector.broadcast %20 : vector<8x1xf32> to vector<8x128xf32>
    %22 = arith.mulf %17, %21 : vector<8x128xf32>
    %23 = vector.broadcast %1 : vector<1x128xf32> to vector<8x128xf32>
    %24 = arith.mulf %22, %23 : vector<8x128xf32>
    %25 = vector.broadcast %2 : vector<1x128xf32> to vector<8x128xf32>
    %26 = arith.addf %24, %25 : vector<8x128xf32>
    %c0_10 = arith.constant 0 : index
    %c0_11 = arith.constant 0 : index
    %27 = vector.load %arg5[%c0_10, %c0_11] : memref<128x128xf32, #tpu.memory_space<vmem>>, vector<128x128xf32>
    %cst_12 = arith.constant dense<0.000000e+00> : vector<8x128xf32>
    %28 = tpu.matmul %26, %27, %cst_12 {dimension_numbers = #tpu.dot_dimension_numbers<[1], [0], [0], [1], [0, 0, 1, 1], [], []>} : vector<8x128xf32>, vector<128x128xf32>, vector<8x128xf32> -> vector<8x128xf32>
    %c0_13 = arith.constant 0 : index
    %c0_14 = arith.constant 0 : index
    %29 = vector.load %arg6[%c0_13, %c0_14] : memref<1x128xf32, #tpu.memory_space<vmem>>, vector<1x128xf32>
    %30 = vector.broadcast %29 : vector<1x128xf32> to vector<8x128xf32>
    %31 = arith.addf %28, %30 : vector<8x128xf32>
    %cst_15 = arith.constant 5.000000e-01 : f32
    %32 = vector.broadcast %cst_15 : f32 to vector<8x128xf32>
    %33 = arith.mulf %32, %31 : vector<8x128xf32>
    %cst_16 = arith.constant 0.707106769 : f32
    %34 = vector.broadcast %cst_16 : f32 to vector<8x128xf32>
    %35 = arith.mulf %31, %34 : vector<8x128xf32>
    %36 = math.erf %35 : vector<8x128xf32>
    %cst_17 = arith.constant 1.000000e+00 : f32
    %37 = vector.broadcast %cst_17 : f32 to vector<8x128xf32>
    %38 = arith.addf %37, %36 : vector<8x128xf32>
    %39 = arith.mulf %33, %38 : vector<8x128xf32>
    %c0_18 = arith.constant 0 : index
    %c0_19 = arith.constant 0 : index
    %40 = vector.load %arg7[%c0_18, %c0_19] : memref<1x128xf32, #tpu.memory_space<vmem>>, vector<1x128xf32>
    %c0_20 = arith.constant 0 : index
    %c0_21 = arith.constant 0 : index
    %41 = vector.load %arg8[%c0_20, %c0_21] : memref<1x128xf32, #tpu.memory_space<vmem>>, vector<1x128xf32>
    %cst_22 = arith.constant dense<0.000000e+00> : vector<8xf32>
    %42 = vector.multi_reduction <add>, %39, %cst_22 [1] : vector<8x128xf32> to vector<8xf32>
    %43 = vector.shape_cast %42 : vector<8xf32> to vector<8x1xf32>
    %cst_23 = arith.constant 7.812500e-03 : f32
    %44 = vector.broadcast %cst_23 : f32 to vector<8x1xf32>
    %45 = arith.mulf %43, %44 : vector<8x1xf32>
    %46 = arith.mulf %39, %39 : vector<8x128xf32>
    %cst_24 = arith.constant dense<0.000000e+00> : vector<8xf32>
    %47 = vector.multi_reduction <add>, %46, %cst_24 [1] : vector<8x128xf32> to vector<8xf32>
    %48 = vector.shape_cast %47 : vector<8xf32> to vector<8x1xf32>
    %cst_25 = arith.constant 7.812500e-03 : f32
    %49 = vector.broadcast %cst_25 : f32 to vector<8x1xf32>
    %50 = arith.mulf %48, %49 : vector<8x1xf32>
    %51 = arith.mulf %45, %45 : vector<8x1xf32>
    %52 = arith.subf %50, %51 : vector<8x1xf32>
    %cst_26 = arith.constant 0.000000e+00 : f32
    %53 = vector.broadcast %cst_26 : f32 to vector<8x1xf32>
    %54 = arith.maximumf %52, %53 : vector<8x1xf32>
    %55 = vector.broadcast %45 : vector<8x1xf32> to vector<8x128xf32>
    %56 = arith.subf %39, %55 : vector<8x128xf32>
    %cst_27 = arith.constant 9.99999974E-6 : f32
    %57 = vector.broadcast %cst_27 : f32 to vector<8x1xf32>
    %58 = arith.addf %54, %57 : vector<8x1xf32>
    %59 = math.rsqrt %58 : vector<8x1xf32>
    %60 = vector.broadcast %59 : vector<8x1xf32> to vector<8x128xf32>
    %61 = arith.mulf %56, %60 : vector<8x128xf32>
    %62 = vector.broadcast %40 : vector<1x128xf32> to vector<8x128xf32>
    %63 = arith.mulf %61, %62 : vector<8x128xf32>
    %64 = vector.broadcast %41 : vector<1x128xf32> to vector<8x128xf32>
    %65 = arith.addf %63, %64 : vector<8x128xf32>
    %c0_28 = arith.constant 0 : index
    %c0_29 = arith.constant 0 : index
    %66 = vector.load %arg9[%c0_28, %c0_29] : memref<128x128xf32, #tpu.memory_space<vmem>>, vector<128x128xf32>
    %cst_30 = arith.constant dense<0.000000e+00> : vector<8x128xf32>
    %67 = tpu.matmul %65, %66, %cst_30 {dimension_numbers = #tpu.dot_dimension_numbers<[1], [0], [0], [1], [0, 0, 1, 1], [], []>} : vector<8x128xf32>, vector<128x128xf32>, vector<8x128xf32> -> vector<8x128xf32>
    %c0_31 = arith.constant 0 : index
    %c0_32 = arith.constant 0 : index
    %68 = vector.load %arg10[%c0_31, %c0_32] : memref<1x128xf32, #tpu.memory_space<vmem>>, vector<1x128xf32>
    %69 = vector.broadcast %68 : vector<1x128xf32> to vector<8x128xf32>
    %70 = arith.addf %67, %69 : vector<8x128xf32>
    %c0_33 = arith.constant 0 : index
    %c0_34 = arith.constant 0 : index
    %71 = vector.load %arg2[%c0_33, %c0_34] : memref<8x128xf32, #tpu.memory_space<vmem>>, vector<8x128xf32>
    %72 = arith.addf %70, %71 : vector<8x128xf32>
    %cst_35 = arith.constant 5.000000e-01 : f32
    %73 = vector.broadcast %cst_35 : f32 to vector<8x128xf32>
    %74 = arith.mulf %73, %72 : vector<8x128xf32>
    %cst_36 = arith.constant 0.707106769 : f32
    %75 = vector.broadcast %cst_36 : f32 to vector<8x128xf32>
    %76 = arith.mulf %72, %75 : vector<8x128xf32>
    %77 = math.erf %76 : vector<8x128xf32>
    %cst_37 = arith.constant 1.000000e+00 : f32
    %78 = vector.broadcast %cst_37 : f32 to vector<8x128xf32>
    %79 = arith.addf %78, %77 : vector<8x128xf32>
    %80 = arith.mulf %74, %79 : vector<8x128xf32>
    %c0_38 = arith.constant 0 : index
    %c0_39 = arith.constant 0 : index
    %81 = vector.load %arg11[%c0_38, %c0_39] : memref<8x128xf32, #tpu.memory_space<vmem>>, vector<8x128xf32>
    tpu.vector_store %arg11[%c0_38, %c0_39], %80 {strides = array<i32>} : memref<8x128xf32, #tpu.memory_space<vmem>>, vector<8x128xf32>,
    return
  }
  func.func @transform_0(%arg0: i32, %arg1: memref<1xi32, #tpu.memory_space<smem>>) -> (i32, i32) {
    %c0_i32 = arith.constant 0 : i32
    %c0_i32_0 = arith.constant 0 : i32
    return %arg0, %c0_i32 : i32, i32
  }
  func.func @transform_1(%arg0: i32, %arg1: memref<1xi32, #tpu.memory_space<smem>>) -> (i32, i32) {
    %c0_i32 = arith.constant 0 : i32
    %c0_i32_0 = arith.constant 0 : i32
    %c0_i32_1 = arith.constant 0 : i32
    return %c0_i32, %c0_i32_0 : i32, i32
  }
  func.func @transform_2(%arg0: i32, %arg1: memref<1xi32, #tpu.memory_space<smem>>) -> (i32, i32) {
    %c0_i32 = arith.constant 0 : i32
    %c0_i32_0 = arith.constant 0 : i32
    %c0_i32_1 = arith.constant 0 : i32
    return %c0_i32, %c0_i32_0 : i32, i32
  }
  func.func @transform_3(%arg0: i32, %arg1: memref<1xi32, #tpu.memory_space<smem>>) -> (i32, i32) {
    %c0_i32 = arith.constant 0 : i32
    %c0_i32_0 = arith.constant 0 : i32
    %c0_i32_1 = arith.constant 0 : i32
    return %c0_i32, %c0_i32_0 : i32, i32
  }
  func.func @transform_4(%arg0: i32, %arg1: memref<1xi32, #tpu.memory_space<smem>>) -> (i32, i32) {
    %c0_i32 = arith.constant 0 : i32
    %c0_i32_0 = arith.constant 0 : i32
    %c0_i32_1 = arith.constant 0 : i32
    return %c0_i32, %c0_i32_0 : i32, i32
  }
  func.func @transform_5(%arg0: i32, %arg1: memref<1xi32, #tpu.memory_space<smem>>) -> (i32, i32) {
    %c0_i32 = arith.constant 0 : i32
    %c0_i32_0 = arith.constant 0 : i32
    %c0_i32_1 = arith.constant 0 : i32
    return %c0_i32, %c0_i32_0 : i32, i32
  }
  func.func @transform_6(%arg0: i32, %arg1: memref<1xi32, #tpu.memory_space<smem>>) -> (i32, i32) {
    %c0_i32 = arith.constant 0 : i32
    %c0_i32_0 = arith.constant 0 : i32
    %c0_i32_1 = arith.constant 0 : i32
    return %c0_i32, %c0_i32_0 : i32, i32
  }
  func.func @transform_7(%arg0: i32, %arg1: memref<1xi32, #tpu.memory_space<smem>>) -> (i32, i32) {
    %c0_i32 = arith.constant 0 : i32
    %c0_i32_0 = arith.constant 0 : i32
    %c0_i32_1 = arith.constant 0 : i32
    return %c0_i32, %c0_i32_0 : i32, i32
  }
  func.func @transform_8(%arg0: i32, %arg1: memref<1xi32, #tpu.memory_space<smem>>) -> (i32, i32) {
    %c0_i32 = arith.constant 0 : i32
    %c0_i32_0 = arith.constant 0 : i32
    %c0_i32_1 = arith.constant 0 : i32
    return %c0_i32, %c0_i32_0 : i32, i32
  }
  func.func @transform_9(%arg0: i32, %arg1: memref<1xi32, #tpu.memory_space<smem>>) -> (i32, i32) {
    %c0_i32 = arith.constant 0 : i32
    %c0_i32_0 = arith.constant 0 : i32
    return %arg0, %c0_i32 : i32, i32
  }
}

</mosaic_0001>

<bundles_post_ra>
// kernel: tpu_custom_call.1
= control target key start
LH: loop header
LB: loop body
LE: loop exit
PB: predicated region body
PF: predicated region fallthrough
CT: control target
= control target key end

     0   :  { %s1393_s0 = inlined_call_operand.<no memory space> [shape: s32[1], index: 0, kind: input, shape index: {}]   ;;  %s1394_s1 = inlined_call_operand.hbm [shape: f32[16,128], index: 1, kind: input, shape index: {}]   ;;  %s1395_s2 = inlined_call_operand.vmem [shape: f32[1,128], index: 2, kind: input, shape index: {}]   ;;  %s1396_s3 = inlined_call_operand.vmem [shape: f32[1,128], index: 3, kind: input, shape index: {}]   ;;  %s1397_s4 = inlined_call_operand.hbm [shape: f32[128,128], index: 4, kind: input, shape index: {}]   ;;  %s1398_s5 = inlined_call_operand.vmem [shape: f32[1,128], index: 5, kind: input, shape index: {}]   ;;  %s1399_s6 = inlined_call_operand.vmem [shape: f32[1,128], index: 6, kind: input, shape index: {}]   ;;  %s1400_s7 = inlined_call_operand.vmem [shape: f32[1,128], index: 7, kind: input, shape index: {}]   ;;  %s1401_s8 = inlined_call_operand.hbm [shape: f32[128,128], index: 8, kind: input, shape index: {}]   ;;  %s1402_s9 = inlined_call_operand.vmem [shape: f32[1,128], index: 9, kind: input, shape index: {}]   ;;  %s1403_s10 = inlined_call_operand.hbm [shape: f32[16,128], index: 10, kind: output, shape index: {}]  }
   0x1   :  { %1409 = sst [smem:[#allocation16_spill]] %s1397_s4 }
   0x2   :  { %1410 = sst [smem:[#allocation17_spill]] %s1401_s8 }
   0x3   :  { %16 = vsyncpa [#allocation5], 0 }
   0x4   :  { %18 = vsyncpa [#allocation5 + $0x1], 0 }
   0x5   :  { %19 = vsyncpa [#allocation8], 0 }
   0x6   :  { %20 = vsyncpa [#allocation6], 0 }
   0x7   :  { %22 = vsyncpa [#allocation6 + $0x1], 0  ;;  %s1159_s12 = smov 0   ;;  %s1161_s13 = smov 0  }
   0x8   :  { %s1163_s14 = smov 0   ;;  %s1165_s15 = smov 0  }
   0x9 LB: > { %1411 = sst [smem:[#allocation14_spill]] %s1090_s14  ;;  %s1180_s16 = sadd.s32 4294967295, %s1094_s15   ;;  %s1094_s15 = sphi %s1165_s15, %s1433_s15   ;;  %s1090_s14 = sphi %s1163_s14, %s1430_s14   ;;  %s1086_s13 = sphi %s1161_s13, %s1432_s13   ;;  %s1082_s12 = sphi %s1159_s12, %s1431_s12  }
   0xa   : > { %s741_s17 = sadd.s32 4294967294, %s1094_s15   ;;  %p48_p0 = scmp.ne.s32.totalorder %s1086_s13, %s1082_s12 }
   0xb   : > { %p1404_p1 = scmp.eq.s32.totalorder %s1180_s16, 0  ;;  %p246_p3 = scmp.eq.s32.totalorder %s741_s17, 1 }
   0xc   : > { %p742_p5 = scmp.ge.s32.totalorder %s1094_s15, 1  ;;  %p253_p7 = scmp.lt.s32.totalorder %s1094_s15, 3 }
   0xd   : > { %p1189_p4 = por %p1404_p1, %p48_p0  ;;  %p1194_p6 = por %p246_p3, %p48_p0 }
   0xe   : > { %p1199_p8 = pnand %p742_p5, %p253_p7  ;;  %s1096_s21 = smov [#allocation7]  }
   0xf   : > { %s1412_s18 = scalar_select %p1189_p4, 1, 0 }
  0x10   : > { %s1413_s19 = scalar_select %p1194_p6, 1, 0 }
  0x11   : > { %s1414_s20 = scalar_select %p1199_p8, 1, 0 }
  0x12   : > { %s271_s22 = sshll.u32 %s1096_s21, 4  ;;  %p879_p9 = pneg %p1199_p8  ;;  %s272_s22 = int_to_ptr.vmem [resolvable:$true] %s271_s22 }
  0x13   : > { %s1097_s24 = smov [#allocation9]   ;;  %s957_s0 = scalar_lea.vmem %s272_s22, 2048 }
  0x14   : > { %p1208_p11 = pnand %p879_p9, %p1404_p1  ;;  %s293_s25 = sshll.u32 %s1097_s24, 4  ;;  %s294_s25 = int_to_ptr.vmem [resolvable:$true] %s293_s25 }
  0x15   : > { %p958_p13 = scmp.ne.s32.totalorder %s272_s22, %s957_s0  ;;  %p965_p5 = scmp.lt.s32.totalorder %s272_s22, %s272_s22 }
  0x16   : > { %p948_p12 = pneg %p1208_p11  ;;  %p966_p7 = scmp.lt.s32.totalorder %s957_s0, %s957_s0 }
  0x18   : > { %p960_p0 = pnand %p958_p13, %p948_p12  ;;  %p967_p10 = por %p966_p7, %p965_p5 }
  0x1a   : > { %p961_p3 = pneg %p960_p0 }
  0x1c   : > { %p968_p9 = pnand %p967_p10, %p961_p3 }
  0x1e   : > { %971 = shalt.err (!%p968_p9)
}
  0x1f   : > { %s1098_s26 = smov 128   ;;  %s1099_s27 = smov 8  }
  0x20   : > { %s1416_s4 = sld [smem:[#allocation16_spill]]  ;;  %s983_s30 = scalar_lea.vmem %s294_s25, 2048 }
  0x21   : > { %p984_p1 = scmp.ne.s32.totalorder %s294_s25, %s983_s30  ;;  %p991_p2 = scmp.lt.s32.totalorder %s294_s25, %s294_s25 }
  0x22   : > { %p992_p6 = scmp.lt.s32.totalorder %s983_s30, %s983_s30 }
  0x23   : > { %p986_p13 = pnand %p984_p1, %p948_p12 }
  0x24   : > { %p993_p5 = por %p992_p6, %p991_p2 }
  0x25   : > { %p987_p0 = pneg %p986_p13 }
  0x26   : > { %882 = dma.hbm_to_vmem [thread:$0]  (!%p1208_p11), %s1416_s4, 2048, %s272_s22, [#allocation8], %s1098_s26, %s1098_s26, %s1099_s27  }
  0x27   : > { %p994_p10 = pnand %p993_p5, %p987_p0 }
  0x29   : > { %997 = shalt.err (!%p994_p10)
}
  0x2a   : > { %s1417_s8 = sld [smem:[#allocation17_spill]]  ;;  %s1231_s21 = sadd.s32 1, %s1094_s15  }
  0x2b   : > { %s35_s22 = sadd.s32 1, %s1090_s14  ;;  %s32_s23 = ssub.s32 %s1094_s15, %s1231_s21 }
  0x2c   : > { %p42_p1 = scmp.ne.s32.totalorder %s1090_s14, %s1086_s13  ;;  %p33_p2 = scmp.eq.s32.totalorder %s32_s23, 0 }
  0x2d   : > { %p43_p6 = scmp.eq.s32.totalorder %s1094_s15, 0  ;;  %p1418_p12 = scmp.eq.s32.totalorder %s1180_s16, 1 }
  0x2e   : > { %p896_p7 = scmp.lt.s32.totalorder %s1094_s15, 2  ;;  %s310_s28 = sand.u32 1, %s1090_s14  }
  0x2f   : > { %p1241_p3 = por %p1418_p12, %p42_p1  ;;  %p44_p9 = por %p43_p6, %p42_p1 }
  0x30   : > { %885 = dma.hbm_to_vmem [thread:$0]  (!%p1208_p11), %s1417_s8, 2048, %s294_s25, [#allocation8], %s1098_s26, %s1098_s26, %s1099_s27  }
  0x31   : > { %s1419_s24 = scalar_select %p1241_p3, 1, 0 }
  0x32   : > { %s1247_s0 = scalar_select %p33_p2, %s1090_s14, %s35_s22  }
  0x33   : > { %s746_s29 = sshll.u32 %s310_s28, 3  ;;  %s747_s25 = sshll.u32 %s1094_s15, 7 }
  0x34   : > { %1420 = sst [smem:[#allocation15_spill]] %s1247_s0  ;;  %s1254_s30 = scalar_lea.hbm %s1394_s1, %s747_s25 }
  0x35   : > { %s314_s11 = scalar_lea.vmem [#allocation4], %s746_s29  ;;  %p1256_p11 = pnand %p896_p7, %p44_p9 }
  0x36   : > { %s321_s17 = sshll.u32 %s314_s11, 4  ;;  %s311_s22 = scalar_lea.sflag [#allocation5], %s310_s28  ;;  %s322_s17 = int_to_ptr.vmem [resolvable:$true] %s321_s17 }
  0x37   : > { %s998_s4 = scalar_lea.hbm %s1254_s30, 128  ;;  %p1000_p0 = pneg %p1256_p11 }
  0x38   : > { %p999_p13 = scmp.ne.s32.totalorder %s1254_s30, %s998_s4  ;;  %s1003_s27 = scalar_lea.hbm %s1394_s1, 256 }
  0x39   : > { %p1004_p1 = scmp.lt.s32.totalorder %s1254_s30, %s1394_s1  ;;  %p1005_p2 = scmp.lt.s32.totalorder %s1003_s27, %s998_s4 }
  0x3a   : > { %p1001_p5 = pnand %p1000_p0, %p999_p13 }
  0x3b   : > { %p1006_p6 = por %p1005_p2, %p1004_p1 }
  0x3c   : > { %p1002_p10 = pneg %p1001_p5 }
  0x3e   : > { %p1007_p12 = pnand %p1006_p6, %p1002_p10 }
  0x40   : > { %1010 = shalt.err (!%p1007_p12)
}
  0x41   : > { %s1011_s11 = scalar_lea.vmem %s322_s17, 128  ;;  %s1100_s28 = smov [#allocation4]  }
  0x42   : > { %p1012_p7 = scmp.ne.s32.totalorder %s322_s17, %s1011_s11  ;;  %s1016_s0 = sshll.u32 %s1100_s28, 4  ;;  %s1017_s0 = int_to_ptr.vmem [resolvable:$false] %s1016_s0 }
  0x43   : > { %s1018_s14 = scalar_lea.vmem %s1017_s0, 256  ;;  %p1019_p13 = scmp.lt.s32.totalorder %s322_s17, %s1017_s0 }
  0x44   : > { %p1014_p9 = pnand %p1012_p7, %p1000_p0  ;;  %p1020_p5 = scmp.lt.s32.totalorder %s1018_s14, %s1011_s11 }
  0x46   : > { %p1015_p3 = pneg %p1014_p9  ;;  %p1021_p4 = por %p1020_p5, %p1019_p13 }
  0x48   : > { %p1022_p8 = pnand %p1021_p4, %p1015_p3 }
  0x4a   : > { %1025 = shalt.err (!%p1022_p8)
}
  0x4b   : > { %889 = dma.hbm_to_vmem [thread:$0]  (!%p1256_p11), %s1254_s30, 128, %s322_s17, %s311_s22  }
  0x4c   : > { %p1422_p10 = scmp.ne.s32.totalorder %s1414_s20, 0 }
  0x4d   : > { %s1277_s4 = sand.u32 (!%p1422_p10), 1, %s1086_s13   ;;  %p1423_p4 = scmp.ne.s32.totalorder (!%p1422_p10), %s1412_s18, 0 }
  0x4e   : > { %330 = sbr.rel (%p1422_p10) target bundleno = 873 (0x369), region = 56  ;;  %s749_s8 = sshll.u32 (!%p1422_p10), %s1277_s4, 3 }
  0x4f   : > { %s333_s0 = scalar_lea.sflag (!%p1422_p10), [#allocation5], %s1277_s4  ;;  %s336_s14 = scalar_lea.vmem (!%p1422_p10), [#allocation4], %s749_s8 }
  0x53   : > { %1069 = dma.done.wait (%p1423_p4), %s333_s0, 128  }
  0x54   : > { %1071 = vsyncadd (%p1423_p4), %s333_s0, 4294967168  ;;  %p1424_p8 = scmp.eq.s32.totalorder %s1180_s16, 0 }
  0x56   : > { %1073 = dma.done.wait (%p1424_p8), [#allocation8], 4096   ;;  %p1425_p3 = pmov %p1424_p8 }
  0x57   : > { %v1291_v0 = vld [vmem:[%s336_s14] sm:$0xff]  ;;  %v1101_v2 = vmov 0.0   ;;  %v423_v5 = vld [vmem:[#allocation7 + $0x68] sm:$0xff]  ;;  %v422_v6 = vld [vmem:[#allocation7 + $0x60] sm:$0xff]  ;;  %vm1102_vm0 = vmmov 0   ;;  %s760_s0 = sshll.u32 %s1180_s16, 7 }
  0x58   : > { %1075 = vsyncadd (%p1425_p3), [#allocation8], 4294963200  ;;  %382 = vadd.xlane.f32.xlu0 %v1291_v0  ;;  %v385_v1 = vmul.f32 %v1291_v0, %v1291_v0  ;;  %797 = vmatprep.subr.mxu0 %v1101_v2  ;;  %v425_v3 = vld [vmem:[#allocation7 + $0x78] sm:$0xff]  ;;  %v424_v4 = vld [vmem:[#allocation7 + $0x70] sm:$0xff]  ;;  %s378_s14 = scalar_lea.vmem [#allocation10], %s749_s8  ;;  %s650_s17 = scalar_lea.hbm %s1403_s10, %s760_s0 }
  0x59   : > { %832 = vmatprep.subr.mxu1 %v1101_v2  ;;  %798 = vmatpush3.msra.mxu0 %v425_v3  ;;  %v421_v7 = vld [vmem:[#allocation7 + $0x58] sm:$0xff]  ;;  %v420_v8 = vld [vmem:[#allocation7 + $0x50] sm:$0xff]  ;;  %v419_v9 = vld [vmem:[#allocation7 + $0x48] sm:$0xff]  ;;  %s652_s18 = sshll.u32 %s378_s14, 4  ;;  %s639_s23 = scalar_lea.sflag [#allocation6], %s1277_s4  ;;  %s653_s18 = int_to_ptr.vmem [resolvable:$true] %s652_s18 }
  0x5a   : > { %799 = vmatprep.subr.mxu0 %v1101_v2  ;;  %v418_v10 = vld [vmem:[#allocation7 + $0x40] sm:$0xff]  ;;  %829 = vmatprep.mubr.msk.f32.mxu0 %vm1102_vm0, %v1101_v2  ;;  %v417_v11 = vld [vmem:[#allocation7 + $0x38] sm:$0xff]  ;;  %v416_v12 = vld [vmem:[#allocation7 + $0x30] sm:$0xff]  ;;  %s1026_s22 = scalar_lea.vmem %s653_s18, 128  ;;  %p1426_p0 = scmp.ne.s32.totalorder %s1419_s24, 0 }
  0x5b   : > { %800 = vmatpush3.msra.mxu0 %v424_v4  ;;  %864 = vmatprep.mubr.msk.f32.mxu1 %vm1102_vm0, %v1101_v2  ;;  %v415_v13 = vld [vmem:[#allocation7 + $0x28] sm:$0xff]  ;;  %v414_v14 = vld [vmem:[#allocation7 + $0x20] sm:$0xff]  ;;  %v413_v15 = vld [vmem:[#allocation7 + $0x18] sm:$0xff]  ;;  %p1027_p11 = scmp.ne.s32.totalorder %s653_s18, %s1026_s22  ;;  %s1103_s25 = smov [#allocation10]  }
  0x5c   : > { %386 = vadd.xlane.f32.xlu0 %v385_v1  ;;  %801 = vmatprep.subr.mxu0 %v1101_v2  ;;  %v412_v16 = vld [vmem:[#allocation7 + $0x10] sm:$0xff]  ;;  %v411_v17 = vld [vmem:[#allocation7 + $0x8] sm:$0xff]  ;;  %v410_v18 = vld [vmem:[#allocation7] sm:$0xff]  ;;  %s1030_s16 = sshll.u32 %s1103_s25, 4  ;;  %s1031_s16 = int_to_ptr.vmem [resolvable:$false] %s1030_s16 }
  0x5d   : > { %802 = vmatpush3.msra.mxu0 %v423_v5  ;;  %v753_v29 = vld [vmem:[%s1395_s2] ss:$0 sm:$0xff]  ;;  %v553_v44 = vld [vmem:[#allocation9 + $0x78] sm:$0xff]  ;;  %v551_v46 = vld [vmem:[#allocation9 + $0x68] sm:$0xff]  ;;  %p1028_p1 = pnand %p1027_p11, %p1426_p0  ;;  %s1032_s8 = scalar_lea.vmem %s1031_s16, 256 }
  0x5e   : > { %803 = vmatprep.subr.mxu0 %v1101_v2  ;;  %v754_v31 = vld [vmem:[%s1396_s3] ss:$0 sm:$0xff]  ;;  %833 = vmatpush3.msra.mxu1 %v553_v44  ;;  %v550_v47 = vld [vmem:[#allocation9 + $0x60] sm:$0xff]  ;;  %v549_v48 = vld [vmem:[#allocation9 + $0x58] sm:$0xff]  ;;  %p1033_p6 = scmp.lt.s32.totalorder %s653_s18, %s1031_s16  ;;  %p1034_p12 = scmp.lt.s32.totalorder %s1032_s8, %s1026_s22 }
  0x5f   : > { %804 = vmatpush3.msra.mxu0 %v422_v6  ;;  %v755_v34 = vld [vmem:[%s1398_s5] ss:$0 sm:$0xff]  ;;  %834 = vmatprep.subr.mxu1 %v1101_v2  ;;  %v547_v50 = vld [vmem:[#allocation9 + $0x48] sm:$0xff]  ;;  %v546_v51 = vld [vmem:[#allocation9 + $0x40] sm:$0xff]  ;;  %p1029_p2 = pneg %p1028_p1 }
  0x60   : > { %805 = vmatprep.subr.mxu0 %v1101_v2  ;;  %v552_v45 = vld [vmem:[#allocation9 + $0x70] sm:$0xff]  ;;  %v545_v52 = vld [vmem:[#allocation9 + $0x38] sm:$0xff]  ;;  %v543_v54 = vld [vmem:[#allocation9 + $0x28] sm:$0xff]  ;;  %p1035_p7 = por %p1034_p12, %p1033_p6 }
  0x61   : > { %806 = vmatpush3.msra.mxu0 %v421_v7  ;;  %835 = vmatpush3.msra.mxu1 %v552_v45  ;;  %v548_v49 = vld [vmem:[#allocation9 + $0x50] sm:$0xff]  ;;  %v542_v55 = vld [vmem:[#allocation9 + $0x20] sm:$0xff]  ;;  %v541_v56 = vld [vmem:[#allocation9 + $0x18] sm:$0xff] }
  0x62   : > { %807 = vmatprep.subr.mxu0 %v1101_v2  ;;  %836 = vmatprep.subr.mxu1 %v1101_v2  ;;  %v544_v53 = vld [vmem:[#allocation9 + $0x30] sm:$0xff]  ;;  %v539_v58 = vld [vmem:[#allocation9 + $0x8] sm:$0xff]  ;;  %v538_v59 = vld [vmem:[#allocation9] sm:$0xff]  ;;  %p1036_p9 = pnand %p1035_p7, %p1029_p2 }
  0x63   : > { %808 = vmatpush3.msra.mxu0 %v420_v8  ;;  %837 = vmatpush3.msra.mxu1 %v551_v46  ;;  %v540_v57 = vld [vmem:[#allocation9 + $0x10] sm:$0xff] }
  0x64   : > { %809 = vmatprep.subr.mxu0 %v1101_v2  ;;  %838 = vmatprep.subr.mxu1 %v1101_v2  ;;  %v756_v8 = vld [vmem:[%s1399_s6] ss:$0 sm:$0xff] }
  0x65   : > { %810 = vmatpush3.msra.mxu0 %v419_v9  ;;  %839 = vmatpush3.msra.mxu1 %v550_v47  ;;  %v757_v9 = vld [vmem:[%s1400_s7] ss:$0 sm:$0xff] }
  0x66   : > { %811 = vmatprep.subr.mxu0 %v1101_v2  ;;  %840 = vmatprep.subr.mxu1 %v1101_v2 }
  0x67   : > { %812 = vmatpush3.msra.mxu0 %v418_v10  ;;  %841 = vmatpush3.msra.mxu1 %v549_v48 }
  0x68   : > { %813 = vmatprep.subr.mxu0 %v1101_v2  ;;  %842 = vmatprep.subr.mxu1 %v1101_v2 }
  0x69   : > { %814 = vmatpush3.msra.mxu0 %v417_v11  ;;  %843 = vmatpush3.msra.mxu1 %v548_v49 }
  0x6a   : > { %815 = vmatprep.subr.mxu0 %v1101_v2  ;;  %844 = vmatprep.subr.mxu1 %v1101_v2 }
  0x6b   : > { %816 = vmatpush3.msra.mxu0 %v416_v12  ;;  %845 = vmatpush3.msra.mxu1 %v547_v50  ;;  %v758_v12 = vld [vmem:[%s1402_s9] ss:$0 sm:$0xff] }
  0x6c   : > { %817 = vmatprep.subr.mxu0 %v1101_v2  ;;  %846 = vmatprep.subr.mxu1 %v1101_v2 }
  0x6d   : > { %818 = vmatpush3.msra.mxu0 %v415_v13  ;;  %847 = vmatpush3.msra.mxu1 %v546_v51 }
  0x6e   : > { %819 = vmatprep.subr.mxu0 %v1101_v2  ;;  %848 = vmatprep.subr.mxu1 %v1101_v2 }
  0x6f   : > { %820 = vmatpush3.msra.mxu0 %v414_v14  ;;  %849 = vmatpush3.msra.mxu1 %v545_v52 }
  0x70   : > { %821 = vmatprep.subr.mxu0 %v1101_v2  ;;  %850 = vmatprep.subr.mxu1 %v1101_v2 }
  0x71   : > { %822 = vmatpush3.msra.mxu0 %v413_v15  ;;  %851 = vmatpush3.msra.mxu1 %v544_v53 }
  0x72   : > { %823 = vmatprep.subr.mxu0 %v1101_v2  ;;  %852 = vmatprep.subr.mxu1 %v1101_v2 }
  0x73   : > { %824 = vmatpush3.msra.mxu0 %v412_v16  ;;  %853 = vmatpush3.msra.mxu1 %v543_v54 }
  0x74   : > { %825 = vmatprep.subr.mxu0 %v1101_v2  ;;  %854 = vmatprep.subr.mxu1 %v1101_v2 }
  0x75   : > { %826 = vmatpush3.msra.mxu0 %v411_v17  ;;  %855 = vmatpush3.msra.mxu1 %v542_v55 }
  0x76   : > { %827 = vmatprep.subr.mxu0 %v1101_v2  ;;  %856 = vmatprep.subr.mxu1 %v1101_v2 }
  0x77   : > { %828 = vmatpush3.msra.mxu0 %v410_v18  ;;  %857 = vmatpush3.msra.mxu1 %v541_v56 }
  0x78   : > { %858 = vmatprep.subr.mxu1 %v1101_v2 }
  0x79   : > { %859 = vmatpush3.msra.mxu1 %v540_v57 }
  0x7a   : > { %860 = vmatprep.subr.mxu1 %v1101_v2 }
  0x7b   : > { %861 = vmatpush3.msra.mxu1 %v539_v58 }
  0x7c   : > { %862 = vmatprep.subr.mxu1 %v1101_v2 }
  0x7d   : > { %863 = vmatpush3.msra.mxu1 %v538_v59 }
  0xe1   : > { %v383_v19 = vpop.xlane.xlu0 %382 }
  0xe2   : > { %v384_v20 = vmul.f32 0.03125, %v383_v19 }
  0xe4   : > { %v389_v22 = vmul.f32 %v384_v20, %v384_v20  ;;  %v392_v27 = vsub.f32 %v1291_v0, %v384_v20 }
  0xe5   : > { %v387_v21 = vpop.xlane.xlu0 %386 }
  0xe6   : > { %v388_v23 = vmul.f32 0.03125, %v387_v21 }
  0xe8   : > { %v390_v24 = vsub.f32 %v388_v23, %v389_v22 }
  0xea   : > { %v391_v25 = vmax.f32 %v390_v24, 0.0 }
  0xec   : > { %v393_v26 = vadd.f32 1e-05, %v391_v25 }
  0xee   : > { %938 = vrsqrt.f32 %v393_v26 }
  0xfb   : > { %v939_v28 = vpop.eup %938 }
  0xfc   : > { %v395_v30 = vmul.f32 %v939_v28, %v392_v27 }
  0xfe   : > { %v402_v32 = vmul.f32 %v753_v29, %v395_v30 }
 0x100   : > { %v409_v33 = vadd.f32 %v754_v31, %v402_v32 }
 0x102   : > { %830 = vmatmul.mubr.f32.vlgmr.msra.gmra.mxu0 %v409_v33 }
 0x1c2   : > { %v499_v35 = vpop.f32.mrf.mxu0 }
 0x1c3   : > { %v500_v36 = vadd.f32 %v755_v34, %v499_v35 }
 0x1c4   : > { %v831_v37 = vpop.f32.mrf.mxu0 }
 0x1c5   : > { %v504_v38 = vmul.f32 0.70710677, %v500_v36  ;;  %v503_v40 = vmul.f32 0.5, %v500_v36 }
 0x1c7   : > { %940 = verf.f32 %v504_v38 }
 0x1d4   : > { %v941_v39 = vpop.eup %940 }
 0x1d5   : > { %v506_v41 = vadd.f32 1.0, %v941_v39 }
 0x1d7   : > { %v1325_v42 = vmul.f32 %v506_v41, %v503_v40 }
 0x1d9   : > { %510 = vadd.xlane.f32.xlu1 %v1325_v42  ;;  %v513_v43 = vmul.f32 %v1325_v42, %v1325_v42 }
 0x1dd   : > { %514 = vadd.xlane.f32.xlu1 %v513_v43 }
 0x262   : > { %v511_v60 = vpop.xlane.xlu1 %510 }
 0x263   : > { %v512_v61 = vmul.f32 0.0078125, %v511_v60 }
 0x265   : > { %v517_v63 = vmul.f32 %v512_v61, %v512_v61  ;;  %v520_v6 = vsub.f32 %v1325_v42, %v512_v61 }
 0x266   : > { %v515_v62 = vpop.xlane.xlu1 %514 }
 0x267   : > { %v516_v1 = vmul.f32 0.0078125, %v515_v62 }
 0x269   : > { %v518_v3 = vsub.f32 %v516_v1, %v517_v63 }
 0x26b   : > { %v519_v4 = vmax.f32 %v518_v3, 0.0 }
 0x26d   : > { %v521_v5 = vadd.f32 1e-05, %v519_v4 }
 0x26f   : > { %942 = vrsqrt.f32 %v521_v5 }
 0x27c   : > { %v943_v7 = vpop.eup %942 }
 0x27d   : > { %v523_v2 = vmul.f32 %v943_v7, %v520_v6 }
 0x27f   : > { %v530_v10 = vmul.f32 %v756_v8, %v523_v2 }
 0x281   : > { %v537_v11 = vadd.f32 %v757_v9, %v530_v10 }
 0x283   : > { %865 = vmatmul.mubr.f32.vlgmr.msra.gmra.mxu1 %v537_v11 }
 0x343   : > { %v627_v13 = vpop.f32.mrf.mxu1 }
 0x344   : > { %v628_v14 = vadd.f32 %v758_v12, %v627_v13 }
 0x345   : > { %v866_v15 = vpop.f32.mrf.mxu1 }
 0x346   : > { %v631_v16 = vadd.f32 %v628_v14, %v1291_v0 }
 0x348   : > { %v633_v17 = vmul.f32 0.70710677, %v631_v16  ;;  %v632_v19 = vmul.f32 0.5, %v631_v16 }
 0x34a   : > { %944 = verf.f32 %v633_v17 }
 0x357   : > { %v945_v18 = vpop.eup %944 }
 0x358   : > { %v635_v20 = vadd.f32 1.0, %v945_v18 }
 0x35a   : > { %v636_v21 = vmul.f32 %v635_v20, %v632_v19 }
 0x35c   : > { %637 = vst [vmem:[%s378_s14] sm:$0xff] %v636_v21 }
 0x35d   : > { %1039 = shalt.err (!%p1036_p9)
}
 0x35e   : > { %s1040_s26 = scalar_lea.hbm %s650_s17, 128  ;;  %s1044_s29 = scalar_lea.hbm %s1403_s10, 256 }
 0x35f   : > { %p1041_p13 = scmp.ne.s32.totalorder %s650_s17, %s1040_s26  ;;  %p1045_p4 = scmp.lt.s32.totalorder %s650_s17, %s1403_s10 }
 0x360   : > { %p1046_p8 = scmp.lt.s32.totalorder %s1044_s29, %s1040_s26 }
 0x361   : > { %p1042_p5 = pnand %p1041_p13, %p1426_p0 }
 0x362   : > { %p1047_p3 = por %p1046_p8, %p1045_p4 }
 0x363   : > { %p1043_p10 = pneg %p1042_p5 }
 0x365   : > { %p1048_p11 = pnand %p1047_p3, %p1043_p10 }
 0x367   : > { %1051 = shalt.err (!%p1048_p11)
}
 0x368   : > { %877 = dma.vmem_to_hbm [thread:$0]  (%p1426_p0), %s653_s18, 128, %s650_s17, %s639_s23  }
 0x369 PF: > { %s664_s0 = sand.u32 1, %s1082_s12   ;;  %p1427_p1 = scmp.ne.s32.totalorder %s1413_s19, 0 }
 0x36a   : > { %p1428_p2 = scmp.ge.s32.totalorder %s1094_s15, 2  ;;  %s665_s14 = scalar_lea.sflag [#allocation6], %s664_s0 }
 0x36c   : > { %p891_p6 = pnand %p1428_p2, %p1427_p1 }
 0x36e   : > { %p892_p12 = pneg %p891_p6 }
 0x370   : > { %1077 = dma.done.wait (%p892_p12), %s665_s14, 128  }
 0x371   : > { %1079 = vsyncadd (%p892_p12), %s665_s14, 4294967168  ;;  %s1429_s20 = sld [smem:[#allocation14_spill]]  ;;  %p25_p7 = scmp.ge.s32.totalorder %s1231_s21, 4  }
 0x372   : > { %s1430_s14 = sld [smem:[#allocation15_spill]]  ;;  %s1431_s12 = smov %s1086_s13 }
 0x373   : > { %s1433_s15 = smov %s1231_s21  ;;  %27 = sbr.rel (!%p25_p7) target bundleno = 9 (0x9), region = 109 }
 0x377   : > { %s1432_s13 = smov %s1429_s20 }
 0x378   :  { %670 = vsyncpa [#allocation5], 1 }
 0x379   :  { %672 = vsyncpa [#allocation5 + $0x1], 1 }
 0x37a   :  { %673 = vsyncpa [#allocation8], 1 }
 0x37b   :  { %674 = vsyncpa [#allocation6], 1 }
 0x37c   :  { %676 = vsyncpa [#allocation6 + $0x1], 1 }

</bundles_post_ra>
